<compile_context>
chip_gen: v5e
topology: v5e:2x2
jax: 0.10.0
libtpu: 0.0.40
codegen_flags: <defaults>
</compile_context>

<pallas_src>
import functools

import jax
import jax.numpy as jnp
from jax.experimental import pallas as pl
from jax.experimental.pallas import tpu as pltpu

_LANES = 128


def add_coords(x, with_r=False):
    """AddCoords on NCHW input, matching the PyTorch module exactly:
    xx varies along H (dim 2), yy varies along W (dim 3), both in [-1, 1]."""
    B, _, H, W = x.shape
    xx = jnp.broadcast_to(
        jnp.arange(H, dtype=x.dtype)[None, None, :, None], (B, 1, H, W))
    yy = jnp.broadcast_to(
        jnp.arange(W, dtype=x.dtype)[None, None, None, :], (B, 1, H, W))
    xx = xx / (H - 1) * 2.0 - 1.0
    yy = yy / (W - 1) * 2.0 - 1.0
    parts = [x, xx, yy]
    if with_r:
        parts.append(jnp.sqrt(xx * xx + yy * yy))
    return jnp.concatenate(parts, axis=1)


def _conv_kernel_s1(x_ref, w_ref, b_ref, o_ref, *, kh, w_out, m_out):
    """stride == 1 fast path.

    x_ref: (1, Hp*Wo, KW*C)  rows = padded-image rows x output columns,
                             lanes = width-folded channels.
    w_ref: (KH, KW*C, Cout_pad)   b_ref: (1, Cout_pad)
    o_ref: (1, Ho*Wo, Cout_pad)
    """
    acc = None
    for i in range(kh):
        # Vertical tap i == contiguous row block at sublane offset i*Wo.
        xt = x_ref[0, pl.ds(i * w_out, m_out), :]           # (Ho*Wo, KW*C)
        part = jnp.dot(xt, w_ref[i], preferred_element_type=jnp.float32)
        acc = part if acc is None else acc + part           # vreg accumulate
    o_ref[0] = (acc + b_ref[...]).astype(o_ref.dtype)


def _conv_kernel_strided(x_ref, w_ref, b_ref, o_ref, *, kh, stride, h_out,
                         w_out):
    """General stride > 1 path (per output row; all slices stay 2-D).

    x_ref: (1, Hp, Wo, KW*C)   o_ref: (1, Ho*Wo, Cout_pad)
    """
    b = b_ref[...]
    for h in range(h_out):
        acc = None
        for i in range(kh):
            xt = x_ref[0, h * stride + i, :, :]              # (Wo, KW*C)
            part = jnp.dot(xt, w_ref[i], preferred_element_type=jnp.float32)
            acc = part if acc is None else acc + part
        o_ref[0, pl.ds(h * w_out, w_out), :] = (acc + b).astype(o_ref.dtype)


def coord_conv(x, weight, bias, *, kernel_size, stride, padding, with_r=False):
    """CoordConv forward.

    x:      (B, Cin, H, W)               NCHW (torch convention)
    weight: (Cout, Cin+2[+1], KH, KW)    torch Conv2d layout
    bias:   (Cout,) or None
    returns (B, Cout, Ho, Wo)            NCHW
    """
    # TODO(synk): groups != 1 (grouped conv) is not implemented; the module's
    # default groups=1 is what this kernel covers.
    x = add_coords(x, with_r=with_r)                 # (B, Cin+2[+1], H, W)
    B, C, H, W = x.shape
    Cout = weight.shape[0]
    KH = KW = kernel_size
    Hp, Wp = H + 2 * padding, W + 2 * padding
    Ho = (Hp - KH) // stride + 1
    Wo = (Wp - KW) // stride + 1
    KWC = KW * C
    M = Ho * Wo
    Cout_p = pl.cdiv(Cout, _LANES) * _LANES

    # Glue: NCHW -> NHWC + zero pad (coord channels are zero-padded too,
    # exactly like nn.Conv2d padding applied after AddCoords).
    x_nhwc = jnp.transpose(x, (0, 2, 3, 1))
    x_pad = jnp.pad(x_nhwc,
                    ((0, 0), (padding, padding), (padding, padding), (0, 0)))

    # Wrapper-side width fold: lanes become (j, c) so the kernel only has to
    # shift vertically.  x_fold[b, hp, w, j*C+c] = x_pad[b, hp, w*s + j, c].
    taps = [x_pad[:, :, j:j + stride * (Wo - 1) + 1:stride, :]
            for j in range(KW)]
    x_fold = jnp.concatenate(taps, axis=-1)          # (B, Hp, Wo, KW*C)

    # Weight fold: (Cout, C, KH, KW) -> (KH, KW, C, Cout) -> (KH, KW*C, Cout),
    # zero-pad N(=Cout) to a lane multiple so MXU N and stores are full-lane.
    w_fold = jnp.transpose(weight, (2, 3, 1, 0)).reshape(KH, KWC, Cout)
    w_fold = jnp.pad(w_fold, ((0, 0), (0, 0), (0, Cout_p - Cout)))
    if bias is None:
        bias = jnp.zeros((Cout,), dtype=x.dtype)
    b_p = jnp.pad(bias.astype(x.dtype), (0, Cout_p - Cout)).reshape(1, Cout_p)

    if stride == 1:
        # Flatten (Hp, Wo) -> rows: vertical tap i is rows [i*Wo, i*Wo + M).
        x_in = x_fold.reshape(B, Hp * Wo, KWC)
        kernel = functools.partial(_conv_kernel_s1, kh=KH, w_out=Wo, m_out=M)
        in_spec_x = pl.BlockSpec((1, Hp * Wo, KWC), lambda b: (b, 0, 0))
    else:
        x_in = x_fold
        kernel = functools.partial(_conv_kernel_strided, kh=KH, stride=stride,
                                   h_out=Ho, w_out=Wo)
        in_spec_x = pl.BlockSpec((1, Hp, Wo, KWC), lambda b: (b, 0, 0, 0))

    out_flat = pl.pallas_call(
        kernel,
        out_shape=jax.ShapeDtypeStruct((B, M, Cout_p), x.dtype),
        grid_spec=pltpu.PrefetchScalarGridSpec(
            num_scalar_prefetch=0,
            grid=(B,),
            in_specs=[
                in_spec_x,
                pl.BlockSpec((KH, KWC, Cout_p), lambda b: (0, 0, 0)),
                pl.BlockSpec((1, Cout_p), lambda b: (0, 0)),
            ],
            out_specs=pl.BlockSpec((1, M, Cout_p), lambda b: (b, 0, 0)),
        ),
        compiler_params=pltpu.CompilerParams(
            dimension_semantics=("parallel",)),
    )(x_in, w_fold, b_p)

    # Wrapper: drop lane padding, restore (Ho, Wo), back to NCHW.
    out = out_flat[:, :, :Cout].reshape(B, Ho, Wo, Cout)
    return jnp.transpose(out, (0, 3, 1, 2))


def _reference(x, weight, bias, *, kernel_size, stride, padding, with_r=False):
    """Plain-JAX reference (lax conv) for correctness checking."""
    xr = add_coords(x, with_r=with_r)
    out = jax.lax.conv_general_dilated(
        xr, weight,
        window_strides=(stride, stride),
        padding=[(padding, padding), (padding, padding)],
        dimension_numbers=("NCHW", "OIHW", "NCHW"),
    )
    if bias is not None:
        out = out + bias[None, :, None, None]
    return out


if __name__ == "__main__":
    # CoordConv(input_nc=4, output_dim=8, kernel_size=3, stride=1,
    #           use_bias=True, with_r=False, groups=1, padding=1)
    B, Cin, H, W = 2, 4, 16, 16
    Cout, K, S, P = 8, 3, 1, 1
    Cin_total = Cin + 2            # +2 coord channels (with_r=False)

    key = jax.random.PRNGKey(0)
    kx, kw, kb = jax.random.split(key, 3)
    x = jax.random.normal(kx, (B, Cin, H, W), dtype=jnp.float32)
    # Deterministic, synthetic Conv2d parameters (torch layout: O, I, KH, KW).
    weight = 0.1 * jax.random.normal(kw, (Cout, Cin_total, K, K),
                                     dtype=jnp.float32)
    bias = 0.1 * jax.random.normal(kb, (Cout,), dtype=jnp.float32)

    out = coord_conv(x, weight, bias, kernel_size=K, stride=S, padding=P)
    out = jax.block_until_ready(out)

    ref = _reference(x, weight, bias, kernel_size=K, stride=S, padding=P)
    assert out.shape == (B, Cout, H, W), out.shape
    max_err = float(jnp.max(jnp.abs(out - ref)))
    assert jnp.allclose(out, ref, atol=1e-3, rtol=1e-3), max_err

    print("KERNEL_OK")
</pallas_src>

<mosaic_0001>
module attributes {stable_mosaic.version = 11 : i64} {
  func.func @_conv_kernel_s1(%arg0: i32, %arg1: memref<1x288x18xf32, #tpu.memory_space<vmem>>, %arg2: memref<3x18x128xf32, #tpu.memory_space<vmem>>, %arg3: memref<1x128xf32, #tpu.memory_space<vmem>>, %arg4: memref<1x256x128xf32, #tpu.memory_space<vmem>>) attributes {dimension_semantics = [#tpu.dimension_semantics<parallel>], iteration_bounds = array<i64: 2>, scalar_prefetch = 0 : i64, scratch_operands = 0 : i64, tpu.core_type = #tpu.core_type<tc>, window_params = [{transform_indices = @transform_0, window_bounds = array<i64: 1, 288, 18>}, {pipeline_mode = #tpu.pipeline_mode<synchronous>, transform_indices = @transform_1, window_bounds = array<i64: 3, 18, 128>}, {pipeline_mode = #tpu.pipeline_mode<synchronous>, transform_indices = @transform_2, window_bounds = array<i64: 1, 128>}, {transform_indices = @transform_3, window_bounds = array<i64: 1, 256, 128>}]} {
    %c0 = arith.constant 0 : index
    %c0_0 = arith.constant 0 : index
    %c0_1 = arith.constant 0 : index
    %0 = vector.load %arg1[%c0, %c0_0, %c0_1] : memref<1x288x18xf32, #tpu.memory_space<vmem>>, vector<1x256x18xf32>
    %1 = vector.shape_cast %0 : vector<1x256x18xf32> to vector<256x18xf32>
    %c0_2 = arith.constant 0 : index
    %c0_3 = arith.constant 0 : index
    %c0_4 = arith.constant 0 : index
    %2 = vector.load %arg2[%c0_2, %c0_3, %c0_4] : memref<3x18x128xf32, #tpu.memory_space<vmem>>, vector<1x18x128xf32>
    %3 = vector.shape_cast %2 : vector<1x18x128xf32> to vector<18x128xf32>
    %cst = arith.constant dense<0.000000e+00> : vector<256x128xf32>
    %4 = tpu.matmul %1, %3, %cst {dimension_numbers = #tpu.dot_dimension_numbers<[1], [0], [0], [1], [0, 0, 1, 1], [], []>} : vector<256x18xf32>, vector<18x128xf32>, vector<256x128xf32> -> vector<256x128xf32>
    %c0_5 = arith.constant 0 : index
    %c16 = arith.constant 16 : index
    %c0_6 = arith.constant 0 : index
    %5 = vector.load %arg1[%c0_5, %c16, %c0_6] : memref<1x288x18xf32, #tpu.memory_space<vmem>>, vector<1x256x18xf32>
    %6 = vector.shape_cast %5 : vector<1x256x18xf32> to vector<256x18xf32>
    %c1 = arith.constant 1 : index
    %c0_7 = arith.constant 0 : index
    %c0_8 = arith.constant 0 : index
    %7 = vector.load %arg2[%c1, %c0_7, %c0_8] : memref<3x18x128xf32, #tpu.memory_space<vmem>>, vector<1x18x128xf32>
    %8 = vector.shape_cast %7 : vector<1x18x128xf32> to vector<18x128xf32>
    %cst_9 = arith.constant dense<0.000000e+00> : vector<256x128xf32>
    %9 = tpu.matmul %6, %8, %cst_9 {dimension_numbers = #tpu.dot_dimension_numbers<[1], [0], [0], [1], [0, 0, 1, 1], [], []>} : vector<256x18xf32>, vector<18x128xf32>, vector<256x128xf32> -> vector<256x128xf32>
    %10 = arith.addf %4, %9 : vector<256x128xf32>
    %c0_10 = arith.constant 0 : index
    %c32 = arith.constant 32 : index
    %c0_11 = arith.constant 0 : index
    %11 = vector.load %arg1[%c0_10, %c32, %c0_11] : memref<1x288x18xf32, #tpu.memory_space<vmem>>, vector<1x256x18xf32>
    %12 = vector.shape_cast %11 : vector<1x256x18xf32> to vector<256x18xf32>
    %c2 = arith.constant 2 : index
    %c0_12 = arith.constant 0 : index
    %c0_13 = arith.constant 0 : index
    %13 = vector.load %arg2[%c2, %c0_12, %c0_13] : memref<3x18x128xf32, #tpu.memory_space<vmem>>, vector<1x18x128xf32>
    %14 = vector.shape_cast %13 : vector<1x18x128xf32> to vector<18x128xf32>
    %cst_14 = arith.constant dense<0.000000e+00> : vector<256x128xf32>
    %15 = tpu.matmul %12, %14, %cst_14 {dimension_numbers = #tpu.dot_dimension_numbers<[1], [0], [0], [1], [0, 0, 1, 1], [], []>} : vector<256x18xf32>, vector<18x128xf32>, vector<256x128xf32> -> vector<256x128xf32>
    %16 = arith.addf %10, %15 : vector<256x128xf32>
    %c0_15 = arith.constant 0 : index
    %c0_16 = arith.constant 0 : index
    %17 = vector.load %arg3[%c0_15, %c0_16] : memref<1x128xf32, #tpu.memory_space<vmem>>, vector<1x128xf32>
    %18 = vector.broadcast %17 : vector<1x128xf32> to vector<256x128xf32>
    %19 = arith.addf %16, %18 : vector<256x128xf32>
    %c0_17 = arith.constant 0 : index
    %c0_18 = arith.constant 0 : index
    %c0_19 = arith.constant 0 : index
    %20 = vector.load %arg4[%c0_17, %c0_18, %c0_19] : memref<1x256x128xf32, #tpu.memory_space<vmem>>, vector<1x256x128xf32>
    %21 = vector.shape_cast %20 : vector<1x256x128xf32> to vector<256x128xf32>
    %22 = vector.shape_cast %19 : vector<256x128xf32> to vector<1x256x128xf32>
    tpu.vector_store %arg4[%c0_17, %c0_18, %c0_19], %22 {strides = array<i32>} : memref<1x256x128xf32, #tpu.memory_space<vmem>>, vector<1x256x128xf32>,
    return
  }
  func.func @transform_0(%arg0: i32) -> (i32, i32, i32) {
    %c0_i32 = arith.constant 0 : i32
    %c0_i32_0 = arith.constant 0 : i32
    %c0_i32_1 = arith.constant 0 : i32
    return %arg0, %c0_i32, %c0_i32_0 : i32, i32, i32
  }
  func.func @transform_1(%arg0: i32) -> (i32, i32, i32) {
    %c0_i32 = arith.constant 0 : i32
    %c0_i32_0 = arith.constant 0 : i32
    %c0_i32_1 = arith.constant 0 : i32
    %c0_i32_2 = arith.constant 0 : i32
    return %c0_i32, %c0_i32_0, %c0_i32_1 : i32, i32, i32
  }
  func.func @transform_2(%arg0: i32) -> (i32, i32) {
    %c0_i32 = arith.constant 0 : i32
    %c0_i32_0 = arith.constant 0 : i32
    %c0_i32_1 = arith.constant 0 : i32
    return %c0_i32, %c0_i32_0 : i32, i32
  }
  func.func @transform_3(%arg0: i32) -> (i32, i32, i32) {
    %c0_i32 = arith.constant 0 : i32
    %c0_i32_0 = arith.constant 0 : i32
    %c0_i32_1 = arith.constant 0 : i32
    return %arg0, %c0_i32, %c0_i32_0 : i32, i32, i32
  }
}

</mosaic_0001>

<bundles_post_ra>
// kernel: tpu_custom_call.1
= control target key start
LH: loop header
LB: loop body
LE: loop exit
PB: predicated region body
PF: predicated region fallthrough
CT: control target
= control target key end

     0   :  { %8 = vsyncpa [#allocation3], 0  ;;  %s1651_s0 = inlined_call_operand.vmem [shape: f32[2,288,18], index: 0, kind: input, shape index: {}]   ;;  %s1652_s1 = inlined_call_operand.vmem [shape: f32[3,18,128], index: 1, kind: input, shape index: {}]   ;;  %s1653_s2 = inlined_call_operand.vmem [shape: f32[1,128], index: 2, kind: input, shape index: {}]   ;;  %s1654_s3 = inlined_call_operand.hbm [shape: f32[2,256,128], index: 3, kind: output, shape index: {}]  }
   0x1   :  { %10 = vsyncpa [#allocation3 + $0x1], 0  ;;  %s1227_s12 = smov 0   ;;  %s1229_s13 = smov 0  }
   0x2   :  { %s1231_s14 = smov 0   ;;  %s1233_s15 = smov 0  }
   0x3 LB: > { %s1248_s16 = sadd.s32 4294967295, %s1203_s15   ;;  %s972_s17 = sadd.s32 4294967294, %s1203_s15   ;;  %s1203_s15 = sphi %s1233_s15, %s1660_s15   ;;  %s1199_s14 = sphi %s1231_s14, %s1659_s14   ;;  %s1195_s13 = sphi %s1229_s13, %s1658_s13   ;;  %s1191_s12 = sphi %s1227_s12, %s1657_s12  }
   0x4   : > { %s1252_s18 = sadd.s32 1, %s1203_s15   ;;  %s91_s19 = sadd.s32 1, %s1199_s14 }
   0x5   : > { %s88_s20 = ssub.s32 %s1203_s15, %s1252_s18  ;;  %p101_p0 = scmp.ne.s32.totalorder %s1199_s14, %s1195_s13 }
   0x6   : > { %p89_p1 = scmp.eq.s32.totalorder %s88_s20, 0  ;;  %p102_p2 = scmp.eq.s32.totalorder %s1248_s16, 1 }
   0x7   : > { %p107_p3 = scmp.ne.s32.totalorder %s1195_s13, %s1191_s12  ;;  %p108_p4 = scmp.eq.s32.totalorder %s972_s17, 1 }
   0x8   : > { %s1263_s21 = scalar_select %p89_p1, %s1199_s14, %s91_s19  }
   0x9   : > { %p1265_p5 = por %p102_p2, %p101_p0  ;;  %p1269_p6 = por %p108_p4, %p107_p3 }
   0xa   : > { %p975_p7 = scmp.ge.s32.totalorder %s1203_s15, 1  ;;  %p140_p8 = scmp.lt.s32.totalorder %s1203_s15, 3 }
   0xc   : > { %p141_p9 = pnand %p975_p7, %p140_p8 }
   0xd   : > { %p164_p10 = scmp.lt.s32.totalorder (!%p141_p9), %s1248_s16, 1  ;;  %s161_s29 = sand.u32 (!%p141_p9), 1, %s1195_s13  }
   0xe   : > { %144 = sbr.rel (%p141_p9) target bundleno = 351 (0x15f), region = 32  ;;  %s976_s30 = sshll.u32 (!%p141_p9), %s161_s29, 8 }
   0xf   : > { %s1463_s6 = scalar_lea.vmem (!%p141_p9), [#allocation2], %s976_s30  ;;  %s1088_s7 = sshll.u32 (!%p141_p9), %s1248_s16, 8 }
  0x10   : > { %s906_s10 = scalar_lea.hbm (!%p141_p9), %s1654_s3, %s1088_s7  ;;  %s895_s17 = scalar_lea.sflag (!%p141_p9), [#allocation3], %s161_s29 }
  0x11   : > { %s909_s11 = sshll.u32 (!%p141_p9), %s906_s10, 4  ;;  %s1161_s26 = scalar_lea.hbm (!%p141_p9), %s1654_s3, 512  ;;  %s910_s11 = int_to_ptr.hbm [resolvable:$true] %s909_s11 }
  0x13   : > { %v980_v0 = vld [vmem:[%s1652_s1 + $0x28] sm:$0x3]  ;;  %vm307_vm0 = vcmask 1041408   ;;  %v1049_v1 = vld [vmem:[%s1652_s1 + $0x40] sm:$0x3]  ;;  %v1048_v3 = vld [vmem:[%s1652_s1 + $0x38] sm:$0xff] }
  0x14   : > { %v979_v2 = vld [vmem:[%s1652_s1 + $0x20] sm:$0xff]  ;;  %1089 = vmatpush.msk.msra.mxu3 %vm307_vm0, %v980_v0  ;;  %1050 = vmatpush.msk.msra.mxu2 %vm307_vm0, %v1049_v1  ;;  %v203_v4 = vld [vmem:[%s1652_s1 + $0x10] sm:$0x3]  ;;  %v978_v5 = vld [vmem:[%s1652_s1 + $0x18] sm:$0xff]  ;;  %s165_s19 = scalar_select %p164_p10, %s1248_s16, 1  ;;  %vm210_vm1 = vcmask 146432  }
  0x15   : > { %981 = vmatpush.msk.msra.mxu0 %vm307_vm0, %v980_v0  ;;  %1014 = vmatpush.msk.msra.mxu1 %vm307_vm0, %v203_v4  ;;  %v1047_v6 = vld [vmem:[%s1652_s1 + $0x30] sm:$0xff]  ;;  %v202_v7 = vld [vmem:[%s1652_s1 + $0x8] sm:$0xff]  ;;  %v201_v8 = vld [vmem:[%s1652_s1] sm:$0xff]  ;;  %s907_s16 = sshll.u32 %s1463_s6, 4  ;;  %s908_s16 = int_to_ptr.vmem [resolvable:$true] %s907_s16 }
  0x16   : > { %1090 = vmatpush.msra.mxu3 %v979_v2  ;;  %695 = vmatpush.msra.mxu2 %v1048_v3  ;;  %s1098_s25 = smul.u32 288, %s165_s19  ;;  %v1457_v43 = vld [vmem:[%s1653_s2] ss:$0 sm:$0xff]  ;;  %s1155_s19 = sshra.s32 %s910_s11, 4  ;;  %s1156_s19 = int_to_ptr.hbm [resolvable:$true] %s1155_s19 }
  0x17   : > { %325 = vmatpush.msra.mxu0 %v979_v2  ;;  %447 = vmatpush.msra.mxu1 %v202_v7  ;;  %s1157_s20 = scalar_lea.hbm %s1156_s19, 256  ;;  %p1162_p0 = scmp.lt.s32.totalorder %s1156_s19, %s1654_s3 }
  0x18   : > { %1091 = vmatpush.msra.mxu3 %v978_v5  ;;  %696 = vmatpush.msra.mxu2 %v1047_v6  ;;  %s1312_s28 = scalar_lea.vmem %s1651_s0, %s1098_s25  ;;  %p1158_p11 = scmp.ne.s32.totalorder %s1156_s19, %s1157_s20 }
  0x19   : > { %326 = vmatpush.msra.mxu0 %v978_v5  ;;  %448 = vmatpush.msra.mxu1 %v201_v8  ;;  %v1315_v9 = vld [vmem:[%s1312_s28 + $0xd0] sm:$0xff]  ;;  %v546_v10 = vld [vmem:[%s1312_s28 + $0x20] sm:$0xff]  ;;  %v1327_v13 = vld [vmem:[%s1312_s28 + $0xd8] sm:$0xff]  ;;  %p1163_p1 = scmp.lt.s32.totalorder %s1161_s26, %s1157_s20 }
  0x1a   : > { %1092 = vmatpush.msk.msrb.mxu3 %vm307_vm0, %v203_v4  ;;  %v171_v11 = vld [vmem:[%s1312_s28 + $0x10] sm:$0xff]  ;;  %1051 = vmatmul.msk.f32.vlgmr.msra.gmra.mxu2 %vm210_vm1, %v546_v10  ;;  %v169_v12 = vld [vmem:[%s1312_s28] sm:$0xff]  ;;  %v547_v14 = vld [vmem:[%s1312_s28 + $0x28] sm:$0xff]  ;;  %p1159_p12 = pnand %p1158_p11, %p1265_p5 }
  0x1b   : > { %1006 = vmatmul.msk.f32.vlgmr.msra.gmra.mxu3 %vm210_vm1, %v1315_v9  ;;  %982 = vmatmul.msk.f32.vlgmr.msra.gmra.mxu0 %vm210_vm1, %v171_v11  ;;  %v172_v15 = vld [vmem:[%s1312_s28 + $0x18] sm:$0xff]  ;;  %v170_v16 = vld [vmem:[%s1312_s28 + $0x8] sm:$0xff]  ;;  %v1338_v17 = vld [vmem:[%s1312_s28 + $0xe0] sm:$0xff]  ;;  %p1164_p2 = por %p1163_p1, %p1162_p0 }
  0x1c   : > { %1093 = vmatpush.msrb.mxu3 %v202_v7  ;;  %1015 = vmatmul.msk.f32.vlgmr.msra.gmra.mxu1 %vm210_vm1, %v169_v12  ;;  %v548_v18 = vld [vmem:[%s1312_s28 + $0x30] sm:$0xff]  ;;  %v1347_v19 = vld [vmem:[%s1312_s28 + $0xe8] sm:$0xff]  ;;  %v549_v20 = vld [vmem:[%s1312_s28 + $0x38] sm:$0xff]  ;;  %p1160_p13 = pneg %p1159_p12 }
  0x1d   : > { %v1356_v21 = vld [vmem:[%s1312_s28 + $0xf0] sm:$0xff]  ;;  %v550_v22 = vld [vmem:[%s1312_s28 + $0x40] sm:$0xff]  ;;  %v1365_v23 = vld [vmem:[%s1312_s28 + $0xf8] sm:$0xff] }
  0x1e   : > { %1094 = vmatpush.msrb.mxu3 %v201_v8  ;;  %v551_v24 = vld [vmem:[%s1312_s28 + $0x48] sm:$0xff]  ;;  %v1374_v25 = vld [vmem:[%s1312_s28 + $0x100] sm:$0xff]  ;;  %v552_v26 = vld [vmem:[%s1312_s28 + $0x50] sm:$0xff]  ;;  %p1165_p3 = pnand %p1164_p2, %p1160_p13 }
  0x1f   : > { %v1383_v27 = vld [vmem:[%s1312_s28 + $0x108] sm:$0xff]  ;;  %v553_v28 = vld [vmem:[%s1312_s28 + $0x58] sm:$0xff]  ;;  %v1392_v29 = vld [vmem:[%s1312_s28 + $0xc0] sm:$0xff] }
  0x20   : > { %1095 = vmatpush.msk.msra.mxu3 %vm307_vm0, %v1049_v1  ;;  %v554_v30 = vld [vmem:[%s1312_s28 + $0x60] sm:$0xff]  ;;  %v1401_v31 = vld [vmem:[%s1312_s28 + $0xc8] sm:$0xff]  ;;  %v556_v33 = vld [vmem:[%s1312_s28 + $0x70] sm:$0xff] }
  0x21   : > { %v555_v32 = vld [vmem:[%s1312_s28 + $0x68] sm:$0xff]  ;;  %v557_v34 = vld [vmem:[%s1312_s28 + $0x78] sm:$0xff]  ;;  %v558_v35 = vld [vmem:[%s1312_s28 + $0x80] sm:$0xff] }
  0x22   : > { %1096 = vmatpush.msra.mxu3 %v1048_v3  ;;  %1052 = vmatmul.msk.f32.gmra.mxu2 %vm210_vm1, %v547_v14  ;;  %v559_v36 = vld [vmem:[%s1312_s28 + $0x88] sm:$0xff]  ;;  %v560_v37 = vld [vmem:[%s1312_s28 + $0x90] sm:$0xff]  ;;  %v561_v38 = vld [vmem:[%s1312_s28 + $0x98] sm:$0xff] }
  0x23   : > { %1007 = vmatmul.msk.f32.gmra.mxu3 %vm210_vm1, %v1327_v13  ;;  %983 = vmatmul.msk.f32.gmra.mxu0 %vm210_vm1, %v172_v15  ;;  %v562_v39 = vld [vmem:[%s1312_s28 + $0xa0] sm:$0xff]  ;;  %v563_v47 = vld [vmem:[%s1312_s28 + $0xa8] sm:$0xff]  ;;  %v564_v55 = vld [vmem:[%s1312_s28 + $0xb0] sm:$0xff] }
  0x24   : > { %1097 = vmatpush.msra.mxu3 %v1047_v6  ;;  %1016 = vmatmul.msk.f32.gmra.mxu1 %vm210_vm1, %v170_v16  ;;  %v565_v63 = vld [vmem:[%s1312_s28 + $0xb8] sm:$0xff] }
  0x2a   : > { %1053 = vmatmul.msk.f32.gmra.mxu2 %vm210_vm1, %v548_v18 }
  0x2b   : > { %1008 = vmatmul.msk.f32.gmra.mxu3 %vm210_vm1, %v1338_v17  ;;  %984 = vmatmul.msk.f32.gmra.mxu0 %vm210_vm1, %v546_v10 }
  0x2c   : > { %1017 = vmatmul.msk.f32.gmra.mxu1 %vm210_vm1, %v171_v11 }
  0x32   : > { %1054 = vmatmul.msk.f32.gmra.mxu2 %vm210_vm1, %v549_v20 }
  0x33   : > { %1009 = vmatmul.msk.f32.gmra.mxu3 %vm210_vm1, %v1347_v19  ;;  %985 = vmatmul.msk.f32.gmra.mxu0 %vm210_vm1, %v547_v14 }
  0x34   : > { %1018 = vmatmul.msk.f32.gmra.mxu1 %vm210_vm1, %v172_v15 }
  0x3a   : > { %1055 = vmatmul.msk.f32.gmra.mxu2 %vm210_vm1, %v550_v22 }
  0x3b   : > { %1010 = vmatmul.msk.f32.gmra.mxu3 %vm210_vm1, %v1356_v21  ;;  %986 = vmatmul.msk.f32.gmra.mxu0 %vm210_vm1, %v548_v18 }
  0x3c   : > { %1019 = vmatmul.msk.f32.gmra.mxu1 %vm210_vm1, %v546_v10 }
  0x42   : > { %1056 = vmatmul.msk.f32.gmra.mxu2 %vm210_vm1, %v551_v24 }
  0x43   : > { %1011 = vmatmul.msk.f32.gmra.mxu3 %vm210_vm1, %v1365_v23  ;;  %987 = vmatmul.msk.f32.gmra.mxu0 %vm210_vm1, %v549_v20 }
  0x44   : > { %1020 = vmatmul.msk.f32.gmra.mxu1 %vm210_vm1, %v547_v14 }
  0x4a   : > { %1057 = vmatmul.msk.f32.gmra.mxu2 %vm210_vm1, %v552_v26 }
  0x4b   : > { %1012 = vmatmul.msk.f32.gmra.mxu3 %vm210_vm1, %v1374_v25  ;;  %988 = vmatmul.msk.f32.gmra.mxu0 %vm210_vm1, %v550_v22 }
  0x4c   : > { %1021 = vmatmul.msk.f32.gmra.mxu1 %vm210_vm1, %v548_v18 }
  0x52   : > { %1058 = vmatmul.msk.f32.gmra.mxu2 %vm210_vm1, %v553_v28 }
  0x53   : > { %1013 = vmatmul.msk.f32.gmra.mxu3 %vm210_vm1, %v1383_v27  ;;  %989 = vmatmul.msk.f32.gmra.mxu0 %vm210_vm1, %v551_v24 }
  0x54   : > { %1022 = vmatmul.msk.f32.gmra.mxu1 %vm210_vm1, %v549_v20 }
  0x5a   : > { %1059 = vmatmul.msk.f32.gmra.mxu2 %vm210_vm1, %v554_v30 }
  0x5b   : > { %1039 = vmatmul.msk.f32.vlgmr.msrb.gmra.mxu3 %vm210_vm1, %v1392_v29  ;;  %990 = vmatmul.msk.f32.gmra.mxu0 %vm210_vm1, %v552_v26 }
  0x5c   : > { %1023 = vmatmul.msk.f32.gmra.mxu1 %vm210_vm1, %v550_v22 }
  0x62   : > { %1060 = vmatmul.msk.f32.gmra.mxu2 %vm210_vm1, %v555_v32 }
  0x63   : > { %1040 = vmatmul.msk.f32.gmra.mxu3 %vm210_vm1, %v1401_v31  ;;  %991 = vmatmul.msk.f32.gmra.mxu0 %vm210_vm1, %v553_v28 }
  0x64   : > { %1024 = vmatmul.msk.f32.gmra.mxu1 %vm210_vm1, %v551_v24 }
  0x6a   : > { %1061 = vmatmul.msk.f32.gmra.mxu2 %vm210_vm1, %v556_v33 }
  0x6b   : > { %1041 = vmatmul.msk.f32.gmra.mxu3 %vm210_vm1, %v1315_v9  ;;  %992 = vmatmul.msk.f32.gmra.mxu0 %vm210_vm1, %v554_v30 }
  0x6c   : > { %1025 = vmatmul.msk.f32.gmra.mxu1 %vm210_vm1, %v552_v26 }
  0x72   : > { %1062 = vmatmul.msk.f32.gmra.mxu2 %vm210_vm1, %v557_v34 }
  0x73   : > { %1042 = vmatmul.msk.f32.gmra.mxu3 %vm210_vm1, %v1327_v13  ;;  %993 = vmatmul.msk.f32.gmra.mxu0 %vm210_vm1, %v555_v32 }
  0x74   : > { %1026 = vmatmul.msk.f32.gmra.mxu1 %vm210_vm1, %v553_v28 }
  0x7a   : > { %1063 = vmatmul.msk.f32.gmra.mxu2 %vm210_vm1, %v558_v35 }
  0x7b   : > { %1043 = vmatmul.msk.f32.gmra.mxu3 %vm210_vm1, %v1338_v17  ;;  %994 = vmatmul.msk.f32.gmra.mxu0 %vm210_vm1, %v556_v33 }
  0x7c   : > { %1027 = vmatmul.msk.f32.gmra.mxu1 %vm210_vm1, %v554_v30 }
  0x82   : > { %1064 = vmatmul.msk.f32.gmra.mxu2 %vm210_vm1, %v559_v36 }
  0x83   : > { %1044 = vmatmul.msk.f32.gmra.mxu3 %vm210_vm1, %v1347_v19  ;;  %995 = vmatmul.msk.f32.gmra.mxu0 %vm210_vm1, %v557_v34 }
  0x84   : > { %1028 = vmatmul.msk.f32.gmra.mxu1 %vm210_vm1, %v555_v32 }
  0x8a   : > { %1065 = vmatmul.msk.f32.gmra.mxu2 %vm210_vm1, %v560_v37 }
  0x8b   : > { %1045 = vmatmul.msk.f32.gmra.mxu3 %vm210_vm1, %v1356_v21  ;;  %996 = vmatmul.msk.f32.gmra.mxu0 %vm210_vm1, %v558_v35 }
  0x8c   : > { %1029 = vmatmul.msk.f32.gmra.mxu1 %vm210_vm1, %v556_v33  ;;  %v577_v33 = vld [vmem:[%s1312_s28 + $0x118] sm:$0xff] }
  0x92   : > { %1066 = vmatmul.msk.f32.gmra.mxu2 %vm210_vm1, %v561_v38 }
  0x93   : > { %1046 = vmatmul.msk.f32.gmra.mxu3 %vm210_vm1, %v1365_v23  ;;  %997 = vmatmul.msk.f32.gmra.mxu0 %vm210_vm1, %v559_v36 }
  0x94   : > { %1030 = vmatmul.msk.f32.gmra.mxu1 %vm210_vm1, %v557_v34 }
  0x98   : > { %v328_v40 = vpop.f32.mrf.mxu0 }
  0x99   : > { %v450_v41 = vpop.f32.mrf.mxu1 }
  0x9a   : > { %1067 = vmatmul.msk.f32.gmra.mxu2 %vm210_vm1, %v562_v39  ;;  %v451_v42 = vadd.f32 %v450_v41, %v328_v40 }
  0x9b   : > { %1075 = vmatmul.msk.f32.vlgmr.msra.gmra.mxu3 %vm210_vm1, %v1338_v17  ;;  %998 = vmatmul.msk.f32.gmra.mxu0 %vm210_vm1, %v560_v37 }
  0x9c   : > { %1031 = vmatmul.msk.f32.gmra.mxu1 %vm210_vm1, %v558_v35 }
  0x9d   : > { %v698_v45 = vpop.f32.mrf.mxu2 }
  0x9e   : > { %v1459_v44 = vpop.f32.mrf.mxu3  ;;  %v794_v46 = vadd.f32 %v698_v45, %v451_v42 }
  0xa0   : > { %v830_v48 = vadd.f32 %v1457_v43, %v794_v46  ;;  %v331_v49 = vpop.f32.mrf.mxu0 }
  0xa1   : > { %v453_v50 = vpop.f32.mrf.mxu1 }
  0xa2   : > { %862 = vst [vmem:[%s1463_s6] sm:$0xff] %v830_v48  ;;  %1068 = vmatmul.msk.f32.gmra.mxu2 %vm210_vm1, %v563_v47  ;;  %v454_v51 = vadd.f32 %v453_v50, %v331_v49 }
  0xa3   : > { %1076 = vmatmul.msk.f32.gmra.mxu3 %vm210_vm1, %v1347_v19  ;;  %999 = vmatmul.msk.f32.gmra.mxu0 %vm210_vm1, %v561_v38 }
  0xa4   : > { %1032 = vmatmul.msk.f32.gmra.mxu1 %vm210_vm1, %v559_v36 }
  0xa5   : > { %v701_v53 = vpop.f32.mrf.mxu2 }
  0xa6   : > { %v1471_v52 = vpop.f32.mrf.mxu3  ;;  %v795_v54 = vadd.f32 %v701_v53, %v454_v51 }
  0xa8   : > { %v831_v56 = vadd.f32 %v1457_v43, %v795_v54  ;;  %v334_v57 = vpop.f32.mrf.mxu0 }
  0xa9   : > { %v456_v58 = vpop.f32.mrf.mxu1 }
  0xaa   : > { %863 = vst [vmem:[%s1463_s6 + $0x8] sm:$0xff] %v831_v56  ;;  %1069 = vmatmul.msk.f32.gmra.mxu2 %vm210_vm1, %v564_v55  ;;  %v457_v59 = vadd.f32 %v456_v58, %v334_v57 }
  0xab   : > { %1077 = vmatmul.msk.f32.gmra.mxu3 %vm210_vm1, %v1356_v21  ;;  %1000 = vmatmul.msk.f32.gmra.mxu0 %vm210_vm1, %v562_v39 }
  0xac   : > { %1033 = vmatmul.msk.f32.gmra.mxu1 %vm210_vm1, %v560_v37 }
  0xad   : > { %v704_v61 = vpop.f32.mrf.mxu2 }
  0xae   : > { %v1481_v60 = vpop.f32.mrf.mxu3  ;;  %v796_v62 = vadd.f32 %v704_v61, %v457_v59 }
  0xb0   : > { %v832_v0 = vadd.f32 %v1457_v43, %v796_v62  ;;  %v337_v1 = vpop.f32.mrf.mxu0 }
  0xb1   : > { %v459_v2 = vpop.f32.mrf.mxu1 }
  0xb2   : > { %864 = vst [vmem:[%s1463_s6 + $0x10] sm:$0xff] %v832_v0  ;;  %1070 = vmatmul.msk.f32.gmra.mxu2 %vm210_vm1, %v565_v63  ;;  %v460_v3 = vadd.f32 %v459_v2, %v337_v1 }
  0xb3   : > { %1078 = vmatmul.msk.f32.gmra.mxu3 %vm210_vm1, %v1365_v23  ;;  %1001 = vmatmul.msk.f32.gmra.mxu0 %vm210_vm1, %v563_v47  ;;  %v576_v23 = vld [vmem:[%s1312_s28 + $0x110] sm:$0xff] }
  0xb4   : > { %1034 = vmatmul.msk.f32.gmra.mxu1 %vm210_vm1, %v561_v38 }
  0xb5   : > { %v707_v5 = vpop.f32.mrf.mxu2 }
  0xb6   : > { %v1491_v4 = vpop.f32.mrf.mxu3  ;;  %v797_v6 = vadd.f32 %v707_v5, %v460_v3 }
  0xb8   : > { %v833_v7 = vadd.f32 %v1457_v43, %v797_v6  ;;  %v340_v8 = vpop.f32.mrf.mxu0 }
  0xb9   : > { %v462_v10 = vpop.f32.mrf.mxu1 }
  0xba   : > { %865 = vst [vmem:[%s1463_s6 + $0x18] sm:$0xff] %v833_v7  ;;  %1071 = vmatmul.msk.f32.gmra.mxu2 %vm210_vm1, %v1392_v29  ;;  %v463_v11 = vadd.f32 %v462_v10, %v340_v8 }
  0xbb   : > { %1079 = vmatmul.msk.f32.gmra.mxu3 %vm210_vm1, %v1374_v25  ;;  %1002 = vmatmul.msk.f32.gmra.mxu0 %vm210_vm1, %v564_v55 }
  0xbc   : > { %1035 = vmatmul.msk.f32.gmra.mxu1 %vm210_vm1, %v562_v39 }
  0xbd   : > { %v710_v14 = vpop.f32.mrf.mxu2 }
  0xbe   : > { %v1501_v12 = vpop.f32.mrf.mxu3  ;;  %v798_v15 = vadd.f32 %v710_v14, %v463_v11 }
  0xc0   : > { %v834_v16 = vadd.f32 %v1457_v43, %v798_v15  ;;  %v343_v17 = vpop.f32.mrf.mxu0 }
  0xc1   : > { %v465_v18 = vpop.f32.mrf.mxu1 }
  0xc2   : > { %866 = vst [vmem:[%s1463_s6 + $0x20] sm:$0xff] %v834_v16  ;;  %1072 = vmatmul.msk.f32.gmra.mxu2 %vm210_vm1, %v1401_v31  ;;  %v466_v19 = vadd.f32 %v465_v18, %v343_v17 }
  0xc3   : > { %1080 = vmatmul.msk.f32.gmra.mxu3 %vm210_vm1, %v1383_v27  ;;  %1003 = vmatmul.msk.f32.gmra.mxu0 %vm210_vm1, %v565_v63 }
  0xc4   : > { %1036 = vmatmul.msk.f32.gmra.mxu1 %vm210_vm1, %v563_v47 }
  0xc5   : > { %v713_v21 = vpop.f32.mrf.mxu2 }
  0xc6   : > { %v1511_v20 = vpop.f32.mrf.mxu3  ;;  %v799_v22 = vadd.f32 %v713_v21, %v466_v19 }
  0xc8   : > { %v835_v24 = vadd.f32 %v1457_v43, %v799_v22  ;;  %v346_v25 = vpop.f32.mrf.mxu0 }
  0xc9   : > { %v468_v26 = vpop.f32.mrf.mxu1 }
  0xca   : > { %867 = vst [vmem:[%s1463_s6 + $0x28] sm:$0xff] %v835_v24  ;;  %1073 = vmatmul.msk.f32.gmra.mxu2 %vm210_vm1, %v1315_v9  ;;  %v469_v27 = vadd.f32 %v468_v26, %v346_v25 }
  0xcb   : > { %1081 = vmatmul.msk.f32.gmra.mxu3 %vm210_vm1, %v576_v23  ;;  %1004 = vmatmul.msk.f32.gmra.mxu0 %vm210_vm1, %v1392_v29 }
  0xcc   : > { %1037 = vmatmul.msk.f32.gmra.mxu1 %vm210_vm1, %v564_v55 }
  0xcd   : > { %v716_v30 = vpop.f32.mrf.mxu2 }
  0xce   : > { %v1522_v28 = vpop.f32.mrf.mxu3  ;;  %v800_v32 = vadd.f32 %v716_v30, %v469_v27 }
  0xd0   : > { %v836_v34 = vadd.f32 %v1457_v43, %v800_v32  ;;  %v349_v35 = vpop.f32.mrf.mxu0 }
  0xd1   : > { %v471_v36 = vpop.f32.mrf.mxu1 }
  0xd2   : > { %868 = vst [vmem:[%s1463_s6 + $0x30] sm:$0xff] %v836_v34  ;;  %1074 = vmatmul.msk.f32.gmra.mxu2 %vm210_vm1, %v1327_v13  ;;  %v472_v9 = vadd.f32 %v471_v36, %v349_v35 }
  0xd3   : > { %1082 = vmatmul.msk.f32.gmra.mxu3 %vm210_vm1, %v577_v33  ;;  %1005 = vmatmul.msk.f32.gmra.mxu0 %vm210_vm1, %v1401_v31 }
  0xd4   : > { %1038 = vmatmul.msk.f32.gmra.mxu1 %vm210_vm1, %v565_v63 }
  0xd5   : > { %v719_v37 = vpop.f32.mrf.mxu2 }
  0xd6   : > { %v1533_v29 = vpop.f32.mrf.mxu3  ;;  %v801_v38 = vadd.f32 %v719_v37, %v472_v9 }
  0xd8   : > { %v837_v39 = vadd.f32 %v1457_v43, %v801_v38  ;;  %v352_v40 = vpop.f32.mrf.mxu0 }
  0xd9   : > { %v474_v41 = vpop.f32.mrf.mxu1 }
  0xda   : > { %869 = vst [vmem:[%s1463_s6 + $0x38] sm:$0xff] %v837_v39  ;;  %v475_v13 = vadd.f32 %v474_v41, %v352_v40 }
  0xdd   : > { %v722_v45 = vpop.f32.mrf.mxu2 }
  0xde   : > { %v1537_v42 = vpop.f32.mrf.mxu3  ;;  %v802_v46 = vadd.f32 %v722_v45, %v475_v13 }
  0xe0   : > { %v838_v31 = vadd.f32 %v1457_v43, %v802_v46  ;;  %v355_v47 = vpop.f32.mrf.mxu0  ;;  %v523_v46 = vadd.f32 %v1537_v42, %v1459_v44 }
  0xe1   : > { %v477_v48 = vpop.f32.mrf.mxu1 }
  0xe2   : > { %870 = vst [vmem:[%s1463_s6 + $0x40] sm:$0xff] %v838_v31  ;;  %v478_v49 = vadd.f32 %v477_v48, %v355_v47 }
  0xe5   : > { %v725_v51 = vpop.f32.mrf.mxu2 }
  0xe6   : > { %v1541_v50 = vpop.f32.mrf.mxu3  ;;  %v803_v53 = vadd.f32 %v725_v51, %v478_v49 }
  0xe8   : > { %v839_v54 = vadd.f32 %v1457_v43, %v803_v53  ;;  %v358_v55 = vpop.f32.mrf.mxu0 }
  0xe9   : > { %v480_v56 = vpop.f32.mrf.mxu1 }
  0xea   : > { %871 = vst [vmem:[%s1463_s6 + $0x48] sm:$0xff] %v839_v54  ;;  %v481_v57 = vadd.f32 %v480_v56, %v358_v55 }
  0xed   : > { %v728_v59 = vpop.f32.mrf.mxu2 }
  0xee   : > { %v1545_v58 = vpop.f32.mrf.mxu3  ;;  %v804_v61 = vadd.f32 %v728_v59, %v481_v57  ;;  %v526_v57 = vadd.f32 %v1541_v50, %v1471_v52 }
  0xf0   : > { %v840_v62 = vadd.f32 %v1457_v43, %v804_v61  ;;  %v361_v63 = vpop.f32.mrf.mxu0 }
  0xf1   : > { %v483_v0 = vpop.f32.mrf.mxu1 }
  0xf2   : > { %872 = vst [vmem:[%s1463_s6 + $0x50] sm:$0xff] %v840_v62  ;;  %v484_v1 = vadd.f32 %v483_v0, %v361_v63 }
  0xf5   : > { %v731_v3 = vpop.f32.mrf.mxu2 }
  0xf6   : > { %v1549_v2 = vpop.f32.mrf.mxu3  ;;  %v805_v5 = vadd.f32 %v731_v3, %v484_v1 }
  0xf8   : > { %v841_v6 = vadd.f32 %v1457_v43, %v805_v5  ;;  %v364_v7 = vpop.f32.mrf.mxu0  ;;  %v529_v5 = vadd.f32 %v1545_v58, %v1481_v60 }
  0xf9   : > { %v486_v8 = vpop.f32.mrf.mxu1 }
  0xfa   : > { %873 = vst [vmem:[%s1463_s6 + $0x58] sm:$0xff] %v841_v6  ;;  %v487_v10 = vadd.f32 %v486_v8, %v364_v7 }
  0xfd   : > { %v734_v14 = vpop.f32.mrf.mxu2 }
  0xfe   : > { %v1553_v11 = vpop.f32.mrf.mxu3  ;;  %v806_v15 = vadd.f32 %v734_v14, %v487_v10 }
 0x100   : > { %v842_v16 = vadd.f32 %v1457_v43, %v806_v15  ;;  %v367_v17 = vpop.f32.mrf.mxu0 }
 0x101   : > { %v489_v18 = vpop.f32.mrf.mxu1 }
 0x102   : > { %874 = vst [vmem:[%s1463_s6 + $0x60] sm:$0xff] %v842_v16  ;;  %v490_v19 = vadd.f32 %v489_v18, %v367_v17  ;;  %v532_v17 = vadd.f32 %v1549_v2, %v1491_v4 }
 0x105   : > { %v737_v22 = vpop.f32.mrf.mxu2 }
 0x106   : > { %v1557_v21 = vpop.f32.mrf.mxu3  ;;  %v807_v23 = vadd.f32 %v737_v22, %v490_v19 }
 0x108   : > { %v843_v24 = vadd.f32 %v1457_v43, %v807_v23  ;;  %v370_v25 = vpop.f32.mrf.mxu0 }
 0x109   : > { %v492_v26 = vpop.f32.mrf.mxu1 }
 0x10a   : > { %875 = vst [vmem:[%s1463_s6 + $0x68] sm:$0xff] %v843_v24  ;;  %v493_v27 = vadd.f32 %v492_v26, %v370_v25 }
 0x10d   : > { %v740_v32 = vpop.f32.mrf.mxu2 }
 0x10e   : > { %v1561_v30 = vpop.f32.mrf.mxu3  ;;  %v808_v33 = vadd.f32 %v740_v32, %v493_v27  ;;  %v535_v27 = vadd.f32 %v1553_v11, %v1501_v12 }
 0x110   : > { %v844_v34 = vadd.f32 %v1457_v43, %v808_v33  ;;  %v373_v35 = vpop.f32.mrf.mxu0 }
 0x111   : > { %v495_v36 = vpop.f32.mrf.mxu1 }
 0x112   : > { %876 = vst [vmem:[%s1463_s6 + $0x70] sm:$0xff] %v844_v34  ;;  %v496_v9 = vadd.f32 %v495_v36, %v373_v35 }
 0x115   : > { %v743_v38 = vpop.f32.mrf.mxu2 }
 0x116   : > { %v1565_v37 = vpop.f32.mrf.mxu3  ;;  %v809_v39 = vadd.f32 %v743_v38, %v496_v9 }
 0x118   : > { %v845_v40 = vadd.f32 %v1457_v43, %v809_v39  ;;  %v376_v41 = vpop.f32.mrf.mxu0  ;;  %v538_v39 = vadd.f32 %v1557_v21, %v1511_v20 }
 0x119   : > { %v498_v13 = vpop.f32.mrf.mxu1 }
 0x11a   : > { %877 = vst [vmem:[%s1463_s6 + $0x78] sm:$0xff] %v845_v40  ;;  %v499_v45 = vadd.f32 %v498_v13, %v376_v41 }
 0x11d   : > { %v746_v31 = vpop.f32.mrf.mxu2 }
 0x11e   : > { %v770_v47 = vpop.f32.mrf.mxu3  ;;  %v810_v48 = vadd.f32 %v746_v31, %v499_v45 }
 0x11f   : > { %v818_v49 = vadd.f32 %v770_v47, %v523_v46 }
 0x120   : > { %v846_v51 = vadd.f32 %v1457_v43, %v810_v48  ;;  %v379_v54 = vpop.f32.mrf.mxu0  ;;  %v541_v48 = vadd.f32 %v1561_v30, %v1522_v28  ;;  %v544_v28 = vadd.f32 %v1565_v37, %v1533_v29 }
 0x121   : > { %v854_v53 = vadd.f32 %v1457_v43, %v818_v49  ;;  %v501_v55 = vpop.f32.mrf.mxu1 }
 0x122   : > { %878 = vst [vmem:[%s1463_s6 + $0x80] sm:$0xff] %v846_v51  ;;  %v502_v56 = vadd.f32 %v501_v55, %v379_v54 }
 0x123   : > { %886 = vst [vmem:[%s1463_s6 + $0xc0] sm:$0xff] %v854_v53 }
 0x125   : > { %v749_v59 = vpop.f32.mrf.mxu2 }
 0x126   : > { %v773_v44 = vpop.f32.mrf.mxu3  ;;  %v811_v42 = vadd.f32 %v749_v59, %v502_v56 }
 0x127   : > { %v819_v61 = vadd.f32 %v773_v44, %v526_v57 }
 0x128   : > { %v847_v62 = vadd.f32 %v1457_v43, %v811_v42  ;;  %v382_v0 = vpop.f32.mrf.mxu0 }
 0x129   : > { %v855_v63 = vadd.f32 %v1457_v43, %v819_v61  ;;  %v504_v1 = vpop.f32.mrf.mxu1 }
 0x12a   : > { %879 = vst [vmem:[%s1463_s6 + $0x88] sm:$0xff] %v847_v62  ;;  %v505_v3 = vadd.f32 %v504_v1, %v382_v0 }
 0x12b   : > { %887 = vst [vmem:[%s1463_s6 + $0xc8] sm:$0xff] %v855_v63 }
 0x12d   : > { %v752_v6 = vpop.f32.mrf.mxu2 }
 0x12e   : > { %v776_v52 = vpop.f32.mrf.mxu3  ;;  %v812_v50 = vadd.f32 %v752_v6, %v505_v3 }
 0x12f   : > { %v820_v7 = vadd.f32 %v776_v52, %v529_v5 }
 0x130   : > { %v848_v8 = vadd.f32 %v1457_v43, %v812_v50  ;;  %v385_v14 = vpop.f32.mrf.mxu0 }
 0x131   : > { %v856_v10 = vadd.f32 %v1457_v43, %v820_v7  ;;  %v507_v15 = vpop.f32.mrf.mxu1 }
 0x132   : > { %880 = vst [vmem:[%s1463_s6 + $0x90] sm:$0xff] %v848_v8  ;;  %v508_v16 = vadd.f32 %v507_v15, %v385_v14 }
 0x133   : > { %888 = vst [vmem:[%s1463_s6 + $0xd0] sm:$0xff] %v856_v10 }
 0x135   : > { %v755_v18 = vpop.f32.mrf.mxu2 }
 0x136   : > { %v779_v60 = vpop.f32.mrf.mxu3  ;;  %v813_v58 = vadd.f32 %v755_v18, %v508_v16 }
 0x137   : > { %v821_v19 = vadd.f32 %v779_v60, %v532_v17 }
 0x138   : > { %v849_v22 = vadd.f32 %v1457_v43, %v813_v58  ;;  %v388_v24 = vpop.f32.mrf.mxu0 }
 0x139   : > { %v857_v23 = vadd.f32 %v1457_v43, %v821_v19  ;;  %v510_v25 = vpop.f32.mrf.mxu1 }
 0x13a   : > { %881 = vst [vmem:[%s1463_s6 + $0x98] sm:$0xff] %v849_v22  ;;  %v511_v26 = vadd.f32 %v510_v25, %v388_v24 }
 0x13b   : > { %889 = vst [vmem:[%s1463_s6 + $0xd8] sm:$0xff] %v857_v23 }
 0x13d   : > { %v758_v32 = vpop.f32.mrf.mxu2 }
 0x13e   : > { %v782_v4 = vpop.f32.mrf.mxu3  ;;  %v814_v2 = vadd.f32 %v758_v32, %v511_v26 }
 0x13f   : > { %v822_v33 = vadd.f32 %v782_v4, %v535_v27 }
 0x140   : > { %v850_v34 = vadd.f32 %v1457_v43, %v814_v2  ;;  %v391_v36 = vpop.f32.mrf.mxu0 }
 0x141   : > { %v858_v35 = vadd.f32 %v1457_v43, %v822_v33  ;;  %v513_v9 = vpop.f32.mrf.mxu1 }
 0x142   : > { %882 = vst [vmem:[%s1463_s6 + $0xa0] sm:$0xff] %v850_v34  ;;  %v514_v38 = vadd.f32 %v513_v9, %v391_v36 }
 0x143   : > { %890 = vst [vmem:[%s1463_s6 + $0xe0] sm:$0xff] %v858_v35 }
 0x145   : > { %v761_v40 = vpop.f32.mrf.mxu2 }
 0x146   : > { %v785_v12 = vpop.f32.mrf.mxu3  ;;  %v815_v11 = vadd.f32 %v761_v40, %v514_v38 }
 0x147   : > { %v823_v41 = vadd.f32 %v785_v12, %v538_v39 }
 0x148   : > { %v851_v13 = vadd.f32 %v1457_v43, %v815_v11  ;;  %v394_v46 = vpop.f32.mrf.mxu0 }
 0x149   : > { %v859_v45 = vadd.f32 %v1457_v43, %v823_v41  ;;  %v516_v31 = vpop.f32.mrf.mxu1 }
 0x14a   : > { %883 = vst [vmem:[%s1463_s6 + $0xa8] sm:$0xff] %v851_v13  ;;  %v517_v47 = vadd.f32 %v516_v31, %v394_v46 }
 0x14b   : > { %891 = vst [vmem:[%s1463_s6 + $0xe8] sm:$0xff] %v859_v45 }
 0x14d   : > { %v764_v20 = vpop.f32.mrf.mxu2 }
 0x14e   : > { %v788_v21 = vpop.f32.mrf.mxu3  ;;  %v816_v49 = vadd.f32 %v764_v20, %v517_v47 }
 0x14f   : > { %v824_v51 = vadd.f32 %v788_v21, %v541_v48 }
 0x150   : > { %v852_v53 = vadd.f32 %v1457_v43, %v816_v49  ;;  %v397_v55 = vpop.f32.mrf.mxu0 }
 0x151   : > { %v860_v54 = vadd.f32 %v1457_v43, %v824_v51  ;;  %v519_v56 = vpop.f32.mrf.mxu1 }
 0x152   : > { %884 = vst [vmem:[%s1463_s6 + $0xb0] sm:$0xff] %v852_v53  ;;  %v520_v57 = vadd.f32 %v519_v56, %v397_v55 }
 0x153   : > { %892 = vst [vmem:[%s1463_s6 + $0xf0] sm:$0xff] %v860_v54 }
 0x155   : > { %v767_v30 = vpop.f32.mrf.mxu2 }
 0x156   : > { %v791_v59 = vpop.f32.mrf.mxu3  ;;  %v817_v44 = vadd.f32 %v767_v30, %v520_v57 }
 0x157   : > { %v825_v42 = vadd.f32 %v791_v59, %v544_v28 }
 0x158   : > { %v853_v61 = vadd.f32 %v1457_v43, %v817_v44 }
 0x159   : > { %v861_v62 = vadd.f32 %v1457_v43, %v825_v42 }
 0x15a   : > { %885 = vst [vmem:[%s1463_s6 + $0xb8] sm:$0xff] %v853_v61 }
 0x15b   : > { %893 = vst [vmem:[%s1463_s6 + $0xf8] sm:$0xff] %v861_v62 }
 0x15c   : > { %1168 = shalt.err (!%p1165_p3)
}
 0x15d   : > { %s1205_s29 = smov 128   ;;  %s1206_s30 = smov 8  }
 0x15e   : > { %1099 = dma.vmem_to_hbm [thread:$0]  (%p1265_p5), %s908_s16, 4096, %s910_s11, %s895_s17, %s1205_s29, %s1205_s29, %s1206_s30  }
 0x15f PF: > { %p1105_p4 = scmp.ge.s32.totalorder %s1203_s15, 2  ;;  %s924_s4 = sand.u32 1, %s1191_s12  }
 0x160   : > { %s925_s5 = scalar_lea.sflag [#allocation3], %s924_s4 }
 0x161   : > { %p1102_p7 = pnand %p1105_p4, %p1269_p6 }
 0x163   : > { %p1103_p8 = pneg %p1102_p7 }
 0x165   : > { %1186 = dma.done.wait (%p1103_p8), %s925_s5, 4096  }
 0x166   : > { %1188 = vsyncadd (%p1103_p8), %s925_s5, 4294963200  ;;  %p13_p9 = scmp.ge.s32.totalorder %s1252_s18, 4   ;;  %s1657_s12 = smov %s1195_s13 }
 0x167   : > { %s1658_s13 = smov %s1199_s14  ;;  %s1659_s14 = smov %s1263_s21 }
 0x168   : > { %s1660_s15 = smov %s1252_s18  ;;  %15 = sbr.rel (!%p13_p9) target bundleno = 3 (0x3), region = 69 }
 0x16d   :  { %931 = vsyncpa [#allocation3], 1 }
 0x16e   :  { %933 = vsyncpa [#allocation3 + $0x1], 1 }

</bundles_post_ra>
